<compile_context>
chip_gen: v7x
topology: tpu7x:2x2x1
jax: 0.10.0
libtpu: 0.0.40
codegen_flags: <defaults>
</compile_context>

<pallas_src>
import functools

import jax
import jax.numpy as jnp
from jax.experimental import pallas as pl
from jax.experimental.pallas import tpu as pltpu


def _round_up(x, m):
    return (x + m - 1) // m * m


def _choose_query_tile(nq, block_q):
    """Query tile: multiple of 16, lane-legal, >=2 grid steps for mid-size nq."""
    nq16 = _round_up(max(nq, 1), 16)
    if nq16 <= 256:
        return nq16                       # single block (block dim == full dim)
    half = _round_up((nq16 + 1) // 2, 128)
    return max(128, min(_round_up(block_q, 128), half))


# --------------------------------------------------------------------------- #
# One-shot support kernel: prototypes + per-class distance constants.
# --------------------------------------------------------------------------- #
def _support_kernel(eps, e_dim, sup_ref, w1_ref, b1_ref, w2_ref, b2_ref,
                    avg_ref, p_ref, pterm_ref):
    x = sup_ref[...].astype(jnp.bfloat16)                               # (S8, Fin)
    acc1 = jnp.dot(x, w1_ref[...], preferred_element_type=jnp.float32)
    h = jnp.maximum(acc1.astype(jnp.bfloat16) + b1_ref[...], 0.0)       # bf16
    # Dropout(p=0.5): identity (eval semantics)
    emb = jnp.dot(h, w2_ref[...], preferred_element_type=jnp.float32) + b2_ref[...]

    # Per-class prototypes with one MXU pass: avg[c, s] = 1/every on class rows.
    protos = jnp.dot(avg_ref[...].astype(jnp.bfloat16),
                     emb.astype(jnp.bfloat16),
                     preferred_element_type=jnp.float32)                # (C8, E_pad)

    p_norm2 = jnp.sum(protos * protos, axis=-1, keepdims=True)          # (C8, 1)
    p_sum = jnp.sum(protos, axis=-1, keepdims=True)
    pterm_ref[...] = p_norm2 + 2.0 * eps * p_sum + float(e_dim) * eps * eps

    # P = [-2*protos on real lanes | 1.0 on lane e_dim | 0 elsewhere]
    lane = jax.lax.broadcasted_iota(jnp.int32, protos.shape, 1)
    p_ref[...] = jnp.where(lane == e_dim, 1.0, -2.0 * protos).astype(jnp.bfloat16)


# --------------------------------------------------------------------------- #
# Per-query-block kernel: MLP embedding + distances in one fused pass.
# --------------------------------------------------------------------------- #
def _query_kernel(eps, e_dim, qry_ref, w1_ref, b1_ref, w2_ref, b2_ref,
                  p_ref, pterm_ref, out_ref):
    acc1 = jnp.dot(qry_ref[...], w1_ref[...],
                   preferred_element_type=jnp.float32)                  # (tq, H) f32
    h = jnp.maximum(acc1.astype(jnp.bfloat16) + b1_ref[...], 0.0)       # (tq, H) bf16
    # Dropout(p=0.5): identity (eval semantics)
    emb = jnp.dot(h, w2_ref[...],
                  preferred_element_type=jnp.float32) + b2_ref[...]     # (tq, E_pad)

    # Per-query scalar term; padded lanes of emb are exactly zero.
    q_norm2 = jnp.sum(emb * emb, axis=-1, keepdims=True)                # (tq, 1)
    q_sum = jnp.sum(emb, axis=-1, keepdims=True)
    qterm = q_norm2 - 2.0 * eps * q_sum

    # Fold qterm into the spare padded lane e_dim, then one MXU pass gives
    # dist^2 transposed:  dist^2[c, q] = -2 p_c.q + qterm[q] + pterm[c].
    lane = jax.lax.broadcasted_iota(jnp.int32, emb.shape, 1)
    q_ext = jnp.where(lane == e_dim, qterm, emb).astype(jnp.bfloat16)   # (tq, E_pad)

    dist_sq = jax.lax.dot_general(
        p_ref[...], q_ext, (((1,), (1,)), ((), ())),
        preferred_element_type=jnp.float32) + pterm_ref[...]            # (C8, tq)

    out_ref[...] = -jnp.sqrt(jnp.maximum(dist_sq, 0.0))


# --------------------------------------------------------------------------- #
# Wrapper
# --------------------------------------------------------------------------- #
def prototypical_forward(support_x, query_x, w1, b1, w2, b2, num_class,
                         *, block_q=512, eps=1e-6):
    S, fin = support_x.shape
    nq = query_x.shape[0]
    hidden = w1.shape[1]
    e_dim = w2.shape[1]

    every = S // num_class
    if every == 0:
        raise ValueError("support set must contain at least num_class rows")

    e_pad = _round_up(e_dim + 1, 128)      # guarantee >=1 spare lane for qterm
    s_pad = _round_up(S, 8)
    c8 = _round_up(num_class, 8)
    tq = _choose_query_tile(nq, block_q)
    nq_pad = _round_up(nq, tq)

    # ---- parameters in MXU-friendly layouts (bf16 matmul operands) ----------
    w1_b = jnp.asarray(w1, jnp.float32).astype(jnp.bfloat16)            # (Fin, H)
    b1_b = jnp.asarray(b1, jnp.float32).reshape(1, hidden).astype(jnp.bfloat16)
    w2_b = (jnp.zeros((hidden, e_pad), jnp.float32)
            .at[:, :e_dim].set(jnp.asarray(w2, jnp.float32))).astype(jnp.bfloat16)
    b2_p = (jnp.zeros((1, e_pad), jnp.float32)
            .at[:, :e_dim].set(jnp.asarray(b2, jnp.float32).reshape(1, e_dim)))

    # ---- support path: one-shot precursor pallas_call -----------------------
    sup_p = jnp.zeros((s_pad, fin), jnp.float32).at[:S].set(support_x)
    col = jnp.arange(s_pad)
    cls = col // every
    valid = col < num_class * every        # torch ignores trailing support rows
    avg = ((jnp.arange(c8)[:, None] == cls[None, :]) & valid[None, :]
           ).astype(jnp.float32) / float(every)                          # (C8, S8)

    p_mat, pterm = pl.pallas_call(
        functools.partial(_support_kernel, float(eps), int(e_dim)),
        out_shape=(jax.ShapeDtypeStruct((c8, e_pad), jnp.bfloat16),
                   jax.ShapeDtypeStruct((c8, 1), jnp.float32)),
    )(sup_p, w1_b, b1_b, w2_b, b2_p, avg)

    # ---- query path: tiled, grid over query blocks --------------------------
    qry_p = (jnp.zeros((nq_pad, fin), jnp.bfloat16)
             .at[:nq].set(jnp.asarray(query_x, jnp.bfloat16)))

    resident = lambda i: (0, 0)
    out = pl.pallas_call(
        functools.partial(_query_kernel, float(eps), int(e_dim)),
        out_shape=jax.ShapeDtypeStruct((c8, nq_pad), jnp.float32),
        grid_spec=pltpu.PrefetchScalarGridSpec(
            num_scalar_prefetch=0,
            grid=(nq_pad // tq,),
            in_specs=[
                pl.BlockSpec((tq, fin), lambda i: (i, 0)),      # query block (bf16)
                pl.BlockSpec((fin, hidden), resident),          # w1 (resident)
                pl.BlockSpec((1, hidden), resident),            # b1
                pl.BlockSpec((hidden, e_pad), resident),        # w2
                pl.BlockSpec((1, e_pad), resident),             # b2
                pl.BlockSpec((c8, e_pad), resident),            # P = [-2p | 1]
                pl.BlockSpec((c8, 1), resident),                # per-class const
            ],
            out_specs=pl.BlockSpec((c8, tq), lambda i: (0, i)),
        ),
        compiler_params=pltpu.CompilerParams(
            dimension_semantics=("parallel",),
            vmem_limit_bytes=32 * 1024 * 1024),
    )(qry_p, w1_b, b1_b, w2_b, b2_p, p_mat, pterm)

    return out[:num_class, :nq].T            # (nq, num_class)


def xavier_normal(key, fan_in, fan_out, gain=1.0):
    std = gain * (2.0 / (fan_in + fan_out)) ** 0.5
    # stored as (fan_in, fan_out) so kernels compute x @ W (== x @ W_torch.T)
    return std * jax.random.normal(key, (fan_in, fan_out), dtype=jnp.float32)


def _reference(support_x, query_x, w1, b1, w2, b2, num_class, eps=1e-6):
    def embed(x):
        h = jnp.maximum(x @ w1 + b1, 0.0)
        return h @ w2 + b2
    se = embed(support_x)
    qe = embed(query_x)
    every = se.shape[0] // num_class
    protos = se[:num_class * every].reshape(num_class, every, -1).mean(axis=1)
    diff = protos[None, :, :] - qe[:, None, :] + eps
    return -jnp.sqrt(jnp.sum(diff * diff, axis=-1))


if __name__ == "__main__":
    in_feature = 32
    hidden = 1024
    embedding_dim = 64
    num_class = 2
    support_num = 8     # 4 per class
    query_num = 6

    key = jax.random.PRNGKey(0)
    k1, k2, k3, k4 = jax.random.split(key, 4)

    support_x = jax.random.normal(k1, (support_num, in_feature), dtype=jnp.float32)
    query_x = jax.random.normal(k2, (query_num, in_feature), dtype=jnp.float32)

    w1 = xavier_normal(k3, in_feature, hidden)
    b1 = jnp.zeros((1, hidden), dtype=jnp.float32)
    w2 = xavier_normal(k4, hidden, embedding_dim)
    b2 = jnp.zeros((1, embedding_dim), dtype=jnp.float32)

    out = prototypical_forward(support_x, query_x, w1, b1, w2, b2, num_class)
    out = jax.block_until_ready(out)

    assert out.shape == (query_num, num_class), out.shape
    assert out.dtype == jnp.float32
    assert bool(jnp.all(jnp.isfinite(out)))

    # Loose sanity check vs f32 reference (kernel uses bf16 matmul operands).
    ref = _reference(support_x, query_x, w1, b1, w2, b2, num_class)
    max_err = float(jnp.max(jnp.abs(out - ref)))
    assert max_err < 0.1 * (1.0 + float(jnp.max(jnp.abs(ref)))), max_err

    print("KERNEL_OK")
</pallas_src>

<mosaic_0001>
module attributes {stable_mosaic.version = 11 : i64} {
  func.func @_support_kernel(%arg0: memref<8x32xf32, #tpu.memory_space<vmem>>, %arg1: memref<32x1024xbf16, #tpu.memory_space<vmem>>, %arg2: memref<1x1024xbf16, #tpu.memory_space<vmem>>, %arg3: memref<1024x128xbf16, #tpu.memory_space<vmem>>, %arg4: memref<1x128xf32, #tpu.memory_space<vmem>>, %arg5: memref<8x8xf32, #tpu.memory_space<vmem>>, %arg6: memref<8x128xbf16, #tpu.memory_space<vmem>>, %arg7: memref<8x1xf32, #tpu.memory_space<vmem>>) attributes {dimension_semantics = [], scalar_prefetch = 0 : i64, scratch_operands = 0 : i64, tpu.core_type = #tpu.core_type<tc>} {
    %c0 = arith.constant 0 : index
    %c0_0 = arith.constant 0 : index
    %0 = vector.load %arg0[%c0, %c0_0] : memref<8x32xf32, #tpu.memory_space<vmem>>, vector<8x32xf32>
    %1 = arith.truncf %0 : vector<8x32xf32> to vector<8x32xbf16>
    %c0_1 = arith.constant 0 : index
    %c0_2 = arith.constant 0 : index
    %2 = vector.load %arg1[%c0_1, %c0_2] : memref<32x1024xbf16, #tpu.memory_space<vmem>>, vector<32x1024xbf16>
    %cst = arith.constant dense<0.000000e+00> : vector<8x1024xf32>
    %3 = tpu.matmul %1, %2, %cst {dimension_numbers = #tpu.dot_dimension_numbers<[1], [0], [0], [1], [0, 0, 1, 1], [], []>} : vector<8x32xbf16>, vector<32x1024xbf16>, vector<8x1024xf32> -> vector<8x1024xf32>
    %4 = arith.truncf %3 : vector<8x1024xf32> to vector<8x1024xbf16>
    %c0_3 = arith.constant 0 : index
    %c0_4 = arith.constant 0 : index
    %5 = vector.load %arg2[%c0_3, %c0_4] : memref<1x1024xbf16, #tpu.memory_space<vmem>>, vector<1x1024xbf16>
    %6 = vector.broadcast %5 : vector<1x1024xbf16> to vector<8x1024xbf16>
    %7 = arith.addf %4, %6 : vector<8x1024xbf16>
    %cst_5 = arith.constant 0.000000e+00 : bf16
    %8 = vector.broadcast %cst_5 : bf16 to vector<8x1024xbf16>
    %9 = arith.maximumf %7, %8 : vector<8x1024xbf16>
    %c0_6 = arith.constant 0 : index
    %c0_7 = arith.constant 0 : index
    %10 = vector.load %arg3[%c0_6, %c0_7] : memref<1024x128xbf16, #tpu.memory_space<vmem>>, vector<1024x128xbf16>
    %cst_8 = arith.constant dense<0.000000e+00> : vector<8x128xf32>
    %11 = tpu.matmul %9, %10, %cst_8 {dimension_numbers = #tpu.dot_dimension_numbers<[1], [0], [0], [1], [0, 0, 1, 1], [], []>} : vector<8x1024xbf16>, vector<1024x128xbf16>, vector<8x128xf32> -> vector<8x128xf32>
    %c0_9 = arith.constant 0 : index
    %c0_10 = arith.constant 0 : index
    %12 = vector.load %arg4[%c0_9, %c0_10] : memref<1x128xf32, #tpu.memory_space<vmem>>, vector<1x128xf32>
    %13 = vector.broadcast %12 : vector<1x128xf32> to vector<8x128xf32>
    %14 = arith.addf %11, %13 : vector<8x128xf32>
    %c0_11 = arith.constant 0 : index
    %c0_12 = arith.constant 0 : index
    %15 = vector.load %arg5[%c0_11, %c0_12] : memref<8x8xf32, #tpu.memory_space<vmem>>, vector<8x8xf32>
    %16 = arith.truncf %15 : vector<8x8xf32> to vector<8x8xbf16>
    %17 = arith.truncf %14 : vector<8x128xf32> to vector<8x128xbf16>
    %cst_13 = arith.constant dense<0.000000e+00> : vector<8x128xf32>
    %18 = tpu.matmul %16, %17, %cst_13 {dimension_numbers = #tpu.dot_dimension_numbers<[1], [0], [0], [1], [0, 0, 1, 1], [], []>} : vector<8x8xbf16>, vector<8x128xbf16>, vector<8x128xf32> -> vector<8x128xf32>
    %19 = arith.mulf %18, %18 : vector<8x128xf32>
    %cst_14 = arith.constant dense<0.000000e+00> : vector<8xf32>
    %20 = vector.multi_reduction <add>, %19, %cst_14 [1] : vector<8x128xf32> to vector<8xf32>
    %21 = vector.shape_cast %20 : vector<8xf32> to vector<8x1xf32>
    %cst_15 = arith.constant dense<0.000000e+00> : vector<8xf32>
    %22 = vector.multi_reduction <add>, %18, %cst_15 [1] : vector<8x128xf32> to vector<8xf32>
    %23 = vector.shape_cast %22 : vector<8xf32> to vector<8x1xf32>
    %cst_16 = arith.constant 2.000000e-06 : f32
    %24 = vector.broadcast %cst_16 : f32 to vector<8x1xf32>
    %25 = arith.mulf %24, %23 : vector<8x1xf32>
    %26 = arith.addf %21, %25 : vector<8x1xf32>
    %cst_17 = arith.constant 6.400000e-11 : f32
    %27 = vector.broadcast %cst_17 : f32 to vector<8x1xf32>
    %28 = arith.addf %26, %27 : vector<8x1xf32>
    %c0_18 = arith.constant 0 : index
    %c0_19 = arith.constant 0 : index
    %29 = vector.load %arg7[%c0_18, %c0_19] : memref<8x1xf32, #tpu.memory_space<vmem>>, vector<8x1xf32>
    tpu.vector_store %arg7[%c0_18, %c0_19], %28 {strides = array<i32>} : memref<8x1xf32, #tpu.memory_space<vmem>>, vector<8x1xf32>,
    %30 = tpu.iota {dimensions = array<i32: 1>} : vector<8x128xi32>
    %c64_i32 = arith.constant 64 : i32
    %31 = vector.broadcast %c64_i32 : i32 to vector<8x128xi32>
    %32 = arith.cmpi eq, %30, %31 : vector<8x128xi32>
    %cst_20 = arith.constant -2.000000e+00 : f32
    %33 = vector.broadcast %cst_20 : f32 to vector<8x128xf32>
    %34 = arith.mulf %33, %18 : vector<8x128xf32>
    %cst_21 = arith.constant 1.000000e+00 : f32
    %35 = vector.broadcast %cst_21 : f32 to vector<8x128xf32>
    %36 = arith.select %32, %35, %34 : vector<8x128xi1>, vector<8x128xf32>
    %37 = arith.truncf %36 : vector<8x128xf32> to vector<8x128xbf16>
    %c0_22 = arith.constant 0 : index
    %c0_23 = arith.constant 0 : index
    %38 = vector.load %arg6[%c0_22, %c0_23] : memref<8x128xbf16, #tpu.memory_space<vmem>>, vector<8x128xbf16>
    tpu.vector_store %arg6[%c0_22, %c0_23], %37 {strides = array<i32>} : memref<8x128xbf16, #tpu.memory_space<vmem>>, vector<8x128xbf16>,
    return
  }
}

</mosaic_0001>

<bundles_post_ra>
// kernel: tpu_custom_call.1
= control target key start
LH: loop header
LB: loop body
LE: loop exit
PB: predicated region body
PF: predicated region fallthrough
CT: control target
= control target key end

     0   :  { %13 = vsyncpa [#allocation3], 0  ;;  %s1792_s0 = inlined_call_operand.hbm [shape: f32[8,32], index: 0, kind: input, shape index: {}]   ;;  %s1793_s1 = inlined_call_operand.hbm [shape: bf16[32,1024], index: 1, kind: input, shape index: {}]   ;;  %s1794_s2 = inlined_call_operand.hbm [shape: bf16[1,1024], index: 2, kind: input, shape index: {}]   ;;  %s1795_s3 = inlined_call_operand.hbm [shape: bf16[1024,128], index: 3, kind: input, shape index: {}]   ;;  %s1796_s4 = inlined_call_operand.vmem [shape: f32[1,128], index: 4, kind: input, shape index: {}]   ;;  %s1797_s5 = inlined_call_operand.vmem [shape: f32[8,8], index: 5, kind: input, shape index: {}]   ;;  %s1798_s6 = inlined_call_operand.hbm [shape: bf16[8,128], index: 6, kind: output, shape index: {0}]   ;;  %s1799_s7 = inlined_call_operand.vmem [shape: f32[8,1], index: 7, kind: output, shape index: {1}]  }
   0x1   :  { %14 = vsyncpa [#allocation6], 0 }
   0x2   :  { %15 = vsyncpa [#allocation9], 0 }
   0x3   :  { %16 = vsyncpa [#allocation4], 0  ;;  %s1621_s24 = smov [#allocation5]   ;;  %s1503_s28 = scalar_lea.hbm %s1793_s1, 2048 }
   0x4   :  { %s32_s25 = sshll.u32 %s1621_s24, 4  ;;  %p1504_p0 = scmp.ne.s32.totalorder %s1793_s1, %s1503_s28  ;;  %s33_s25 = int_to_ptr.vmem [resolvable:$true] %s32_s25 }
   0x5   :  { %p1507_p1 = scmp.lt.u32.totalorder %s1503_s28, %s1793_s1 }
   0x7   :  { %p1509_p2 = pnand %p1507_p1, %p1504_p0 }
   0x9   :  { %1512 = shalt.err (!%p1509_p2)
}
   0xa   :  { %s1513_s10 = scalar_lea.vmem %s33_s25, 2048  ;;  %p1518_p4 = scmp.lt.s32.totalorder %s33_s25, %s33_s25 }
   0xb   :  { %p1514_p3 = scmp.ne.s32.totalorder %s33_s25, %s1513_s10  ;;  %p1519_p5 = scmp.lt.s32.totalorder %s1513_s10, %s1513_s10 }
   0xd   :  { %p1520_p6 = por %p1519_p5, %p1518_p4 }
   0xf   :  { %p1521_p7 = pnand %p1520_p6, %p1514_p3 }
  0x11   :  { %1524 = shalt.err (!%p1521_p7)
}
  0x12   :  { %s1622_s11 = smov 512   ;;  %s1623_s12 = smov 32  }
  0x13   :  { %38 = dma.hbm_to_vmem [thread:$0]  %s1793_s1, 2048, %s33_s25, [#allocation6], %s1622_s11, %s1622_s11, %s1623_s12  }
  0x14   :  { %s1624_s15 = smov [#allocation2]   ;;  %s1625_s17 = smov [#allocation7]  }
  0x15   :  { %s23_s16 = sshll.u32 %s1624_s15, 4  ;;  %s45_s18 = sshll.u32 %s1625_s17, 4  ;;  %s24_s16 = int_to_ptr.vmem [resolvable:$true] %s23_s16  ;;  %s46_s18 = int_to_ptr.vmem [resolvable:$true] %s45_s18 }
  0x16   :  { %s1525_s21 = scalar_lea.hbm %s1792_s0, 128 }
  0x17   :  { %p1526_p8 = scmp.ne.s32.totalorder %s1792_s0, %s1525_s21  ;;  %p1529_p9 = scmp.lt.u32.totalorder %s1525_s21, %s1792_s0 }
  0x19   :  { %p1531_p10 = pnand %p1529_p9, %p1526_p8 }
  0x1b   :  { %1534 = shalt.err (!%p1531_p10)
}
  0x1c   :  { %s1535_s1 = scalar_lea.vmem %s24_s16, 128  ;;  %p1540_p12 = scmp.lt.s32.totalorder %s24_s16, %s24_s16 }
  0x1d   :  { %p1536_p11 = scmp.ne.s32.totalorder %s24_s16, %s1535_s1  ;;  %p1541_p13 = scmp.lt.s32.totalorder %s1535_s1, %s1535_s1 }
  0x1f   :  { %p1542_p0 = por %p1541_p13, %p1540_p12 }
  0x21   :  { %p1543_p1 = pnand %p1542_p0, %p1536_p11 }
  0x23   :  { %1546 = shalt.err (!%p1543_p1)
}
  0x24   :  { %26 = dma.hbm_to_vmem [thread:$0]  %s1792_s0, 128, %s24_s16, [#allocation3]  }
  0x25   :  { %s1547_s30 = scalar_lea.hbm %s1794_s2, 128 }
  0x26   :  { %p1548_p2 = scmp.ne.s32.totalorder %s1794_s2, %s1547_s30  ;;  %p1551_p3 = scmp.lt.u32.totalorder %s1547_s30, %s1794_s2 }
  0x28   :  { %p1553_p4 = pnand %p1551_p3, %p1548_p2 }
  0x2a   :  { %1556 = shalt.err (!%p1553_p4)
}
  0x2b   :  { %s1557_s12 = scalar_lea.vmem %s46_s18, 128  ;;  %p1562_p6 = scmp.lt.s32.totalorder %s46_s18, %s46_s18 }
  0x2c   :  { %p1558_p5 = scmp.ne.s32.totalorder %s46_s18, %s1557_s12  ;;  %p1563_p7 = scmp.lt.s32.totalorder %s1557_s12, %s1557_s12 }
  0x2e   :  { %p1564_p8 = por %p1563_p7, %p1562_p6 }
  0x30   :  { %p1565_p9 = pnand %p1564_p8, %p1558_p5 }
  0x32   :  { %1568 = shalt.err (!%p1565_p9)
}
  0x33   :  { %48 = dma.hbm_to_vmem [thread:$0]  %s1794_s2, 128, %s46_s18, [#allocation6]  }
  0x34   :  { %s1626_s14 = smov [#allocation8]   ;;  %s1569_s19 = scalar_lea.hbm %s1795_s3, 8192 }
  0x35   :  { %s54_s15 = sshll.u32 %s1626_s14, 4  ;;  %p1570_p10 = scmp.ne.s32.totalorder %s1795_s3, %s1569_s19  ;;  %s55_s15 = int_to_ptr.vmem [resolvable:$true] %s54_s15 }
  0x36   :  { %p1573_p11 = scmp.lt.u32.totalorder %s1569_s19, %s1795_s3 }
  0x38   :  { %p1575_p12 = pnand %p1573_p11, %p1570_p10 }
  0x3a   :  { %1578 = shalt.err (!%p1575_p12)
}
  0x3b   :  { %s1579_s24 = scalar_lea.vmem %s55_s15, 8192  ;;  %p1584_p0 = scmp.lt.s32.totalorder %s55_s15, %s55_s15 }
  0x3c   :  { %p1580_p13 = scmp.ne.s32.totalorder %s55_s15, %s1579_s24  ;;  %p1585_p1 = scmp.lt.s32.totalorder %s1579_s24, %s1579_s24 }
  0x3e   :  { %p1586_p2 = por %p1585_p1, %p1584_p0 }
  0x40   :  { %p1587_p3 = pnand %p1586_p2, %p1580_p13 }
  0x42   :  { %1590 = shalt.err (!%p1587_p3)
}
  0x43   :  { %s1627_s2 = smov 64   ;;  %s1628_s18 = smov 4  }
  0x44   :  { %60 = dma.hbm_to_vmem [thread:$0]  %s1795_s3, 8192, %s55_s15, [#allocation9], %s1627_s2, %s1627_s2, %s1628_s18  }
  0x45   :  { %1613 = dma.done.wait [#allocation3], 128  }
  0x46   :  { %1614 = vsyncadd [#allocation3], 4294967168 }
  0x47   :  { %1615 = dma.done.wait [#allocation6], 2176  }
  0x48   :  { %1616 = vsyncadd [#allocation6], 4294965120 }
  0x49   :  { %1617 = dma.done.wait [#allocation9], 8192  }
  0x4a   :  { %1618 = vsyncadd [#allocation9], 4294959104  ;;  %v1629_v0 = vmov 0   ;;  %v80_v1 = vld [vmem:[#allocation5] sm:$0xff]  ;;  %v81_v3 = vld [vmem:[#allocation5 + $0x8] sm:$0xff]  ;;  %vm176_vm0 = vcmask 261120  }
  0x4b   :  { %212 = vmatprep.mubr.bf16.mxu0 %v1629_v0  ;;  %253 = vmatprep.mubr.bf16.mxu1 %v1629_v0  ;;  %v84_v2 = vld [vmem:[#allocation5 + $0x20] sm:$0xff]  ;;  %v85_v5 = vld [vmem:[#allocation5 + $0x28] sm:$0xff]  ;;  %v82_v15 = vld [vmem:[#allocation5 + $0x10] sm:$0xff]  ;;  %vm1632_vm1 = vmmov 0   ;;  %vm1161_vm2 = vcmask 1043456   ;;  %vm1157_vm3 = vcmask 64512  }
  0x4c   :  { %v1244_v4 = vcombine.high %v80_v1, %v84_v2  ;;  %v1243_v6 = vcombine.low %v80_v1, %v84_v2  ;;  %v88_v7 = vld [vmem:[#allocation5 + $0x40] sm:$0xff]  ;;  %v1246_v9 = vcombine.high %v81_v3, %v85_v5  ;;  %v1245_v10 = vcombine.low %v81_v3, %v85_v5  ;;  %v89_v12 = vld [vmem:[#allocation5 + $0x48] sm:$0xff]  ;;  %v86_v16 = vld [vmem:[#allocation5 + $0x30] sm:$0xff] }
  0x4d   :  { %v92_v8 = vld [vmem:[#allocation5 + $0x60] sm:$0xff]  ;;  %v93_v13 = vld [vmem:[#allocation5 + $0x68] sm:$0xff]  ;;  %v83_v17 = vld [vmem:[#allocation5 + $0x18] sm:$0xff]  ;;  %v1248_v22 = vcombine.high %v82_v15, %v86_v16  ;;  %v1247_v29 = vcombine.low %v82_v15, %v86_v16 }
  0x4e   :  { %v1252_v11 = vcombine.high %v88_v7, %v92_v8  ;;  %180 = vmatprep.subr.bf16.mxu0 %v1244_v4  ;;  %v1254_v14 = vcombine.high %v89_v12, %v93_v13  ;;  %221 = vmatprep.subr.bf16.mxu1 %v1246_v9  ;;  %v1251_v18 = vcombine.low %v88_v7, %v92_v8  ;;  %v78_v19 = vld [vmem:[#allocation2] sm:$0xff]  ;;  %v90_v23 = vld [vmem:[#allocation5 + $0x50] sm:$0xff]  ;;  %v1438_v34 = vld [vmem:[#allocation8 + $0x40] sm:$0xff]   ;;  %v358_v8 = vlaneseq }
  0x4f   :  { %181 = vmatpush1.bf16.msra.mxu0 %v1243_v6  ;;  %v87_v20 = vld [vmem:[#allocation5 + $0x38] sm:$0xff]  ;;  %222 = vmatpush1.bf16.msra.mxu1 %v1245_v10  ;;  %v1253_v21 = vcombine.low %v89_v12, %v93_v13  ;;  %v94_v24 = vld [vmem:[#allocation5 + $0x70] sm:$0xff]  ;;  %v79_v27 = vpack.c.bf16 %v78_v19, %v78_v19  ;;  %v1439_v36 = vld [vmem:[#allocation8 + $0xc0] sm:$0xff]   ;;  %v1630_v6 = vmov 1966171168  }
  0x50   :  { %182 = vmatprep.subr.bf16.mxu0 %v1252_v11  ;;  %223 = vmatprep.subr.bf16.mxu1 %v1254_v14  ;;  %v1250_v25 = vcombine.high %v83_v17, %v87_v20  ;;  %v91_v26 = vld [vmem:[#allocation5 + $0x58] sm:$0xff]  ;;  %v1249_v30 = vcombine.low %v83_v17, %v87_v20  ;;  %v1256_v31 = vcombine.high %v90_v23, %v94_v24  ;;  %v1440_v37 = vld [vmem:[#allocation8] sm:$0xff]   ;;  %v1442_v39 = vld [vmem:[#allocation8 + $0x48] sm:$0xff]   ;;  %v356_v7 = vunpack.c.l.s4 %v1630_v6 }
  0x51   :  { %v95_v28 = vld [vmem:[#allocation5 + $0x78] sm:$0xff]  ;;  %v1255_v33 = vcombine.low %v90_v23, %v94_v24  ;;  %v1441_v38 = vld [vmem:[#allocation8 + $0x80] sm:$0xff]   ;;  %v1443_v40 = vld [vmem:[#allocation8 + $0xc8] sm:$0xff]   ;;  %v359_v10 = vshrl.u32 %v358_v8, 7 }
  0x52   :  { %v1258_v32 = vcombine.high %v91_v26, %v95_v28  ;;  %v1257_v35 = vcombine.low %v91_v26, %v95_v28  ;;  %v1444_v41 = vld [vmem:[#allocation8 + $0x8] sm:$0xff]   ;;  %v1446_v43 = vld [vmem:[#allocation8 + $0x50] sm:$0xff]   ;;  %v1450_v47 = vld [vmem:[#allocation8 + $0x58] sm:$0xff]   ;;  %v357_v9 = vunpack.c.0.s8 %v356_v7 }
  0x53   :  { %183 = vmatpush1.bf16.msra.mxu0 %v1251_v18  ;;  %224 = vmatpush1.bf16.msra.mxu1 %v1253_v21  ;;  %v1445_v42 = vld [vmem:[#allocation8 + $0x88] sm:$0xff]   ;;  %v1447_v44 = vld [vmem:[#allocation8 + $0xd0] sm:$0xff]   ;;  %v1451_v48 = vld [vmem:[#allocation8 + $0xd8] sm:$0xff]   ;;  %v1741_v23 = vsub.s32 0, %v359_v10 }
  0x54   :  { %262 = vmatprep.subr.bf16.mxu0 %v1248_v22  ;;  %303 = vmatprep.subr.bf16.mxu1 %v1250_v25  ;;  %v1448_v45 = vld [vmem:[#allocation8 + $0x10] sm:$0xff]   ;;  %v1452_v49 = vld [vmem:[#allocation8 + $0x18] sm:$0xff]   ;;  %v1454_v51 = vld [vmem:[#allocation8 + $0x60] sm:$0xff]   ;;  %v1731_v11 = vsub.s32 %v357_v9, %v359_v10 }
  0x55   :  { %v1449_v46 = vld [vmem:[#allocation8 + $0x90] sm:$0xff]   ;;  %v1453_v50 = vld [vmem:[#allocation8 + $0x98] sm:$0xff]   ;;  %v1455_v52 = vld [vmem:[#allocation8 + $0xe0] sm:$0xff]  }
  0x56   :  { %1259 = vmatmul.mubr.msk.bf16.vlgmr.msra.gmra.mrb[0].mxu0 %vm176_vm0, %v79_v27  ;;  %1260 = vmatmul.mubr.msk.bf16.vlgmr.msra.gmra.mrb[0].mxu1 %vm176_vm0, %v79_v27  ;;  %v1456_v53 = vld [vmem:[#allocation8 + $0x20] sm:$0xff]   ;;  %v1458_v55 = vld [vmem:[#allocation8 + $0x68] sm:$0xff]   ;;  %v1462_v59 = vld [vmem:[#allocation8 + $0x70] sm:$0xff]  }
  0x57   :  { %263 = vmatpush1.bf16.msra.mxu0 %v1247_v29  ;;  %304 = vmatpush1.bf16.msra.mxu1 %v1249_v30  ;;  %v1457_v54 = vld [vmem:[#allocation8 + $0xa0] sm:$0xff]   ;;  %v1459_v56 = vld [vmem:[#allocation8 + $0xe8] sm:$0xff]   ;;  %v1463_v60 = vld [vmem:[#allocation8 + $0xf0] sm:$0xff]  }
  0x58   :  { %264 = vmatprep.subr.bf16.mxu0 %v1256_v31  ;;  %305 = vmatprep.subr.bf16.mxu1 %v1258_v32  ;;  %v1460_v57 = vld [vmem:[#allocation8 + $0x28] sm:$0xff]   ;;  %v1464_v61 = vld [vmem:[#allocation8 + $0x30] sm:$0xff]   ;;  %v1466_v63 = vld [vmem:[#allocation8 + $0x78] sm:$0xff]  }
  0x59   :  { %294 = vmatprep.mubr.bf16.mxu0 %v1629_v0  ;;  %335 = vmatprep.mubr.bf16.mxu1 %v1629_v0  ;;  %v1461_v58 = vld [vmem:[#allocation8 + $0xa8] sm:$0xff]   ;;  %v1465_v62 = vld [vmem:[#allocation8 + $0xb0] sm:$0xff]   ;;  %v1467_v1 = vld [vmem:[#allocation8 + $0xf8] sm:$0xff]  }
  0x5a   :  { %v1468_v2 = vld [vmem:[#allocation8 + $0x38] sm:$0xff]   ;;  %v1470_v4 = vld [vmem:[#allocation8 + $0x140] sm:$0xff]   ;;  %v1478_v6 = vld [vmem:[#allocation8 + $0x150] sm:$0xff]  }
  0x5b   :  { %265 = vmatpush1.bf16.msra.mxu0 %v1255_v33  ;;  %306 = vmatpush1.bf16.msra.mxu1 %v1257_v35  ;;  %v1469_v3 = vld [vmem:[#allocation8 + $0xb8] sm:$0xff]   ;;  %v1471_v5 = vld [vmem:[#allocation8 + $0x1c0] sm:$0xff]  }
  0x5c   :  { %1329 = vmatprep.subr.bf16.mxu0 %v1438_v34  ;;  %1351 = vmatprep.subr.bf16.mxu1 %v1439_v36  ;;  %v352_v12 = vld [vmem:[#allocation7] sm:$0xff] }
  0x5d   :  { %v361_v13 = vrot.slane %v352_v12, %v1731_v11  ;;  %v354_v15 = vcombine.high %v352_v12, %v352_v12  ;;  %v1479_v12 = vld [vmem:[#allocation8 + $0x1d0] sm:$0xff]  }
  0x5e   :  { %1261 = vmatmul.mubr.msk.bf16.vlgmr.msra.gmra.mrb[4].mxu0 %vm176_vm0, %v79_v27  ;;  %1262 = vmatmul.mubr.msk.bf16.vlgmr.msra.gmra.mrb[4].mxu1 %vm176_vm0, %v79_v27 }
  0x5f   :  { %1330 = vmatpush3.bf16.msra.mxu0 %v1440_v37  ;;  %1352 = vmatpush3.bf16.msra.mxu1 %v1441_v38  ;;  %v369_v14 = vcombine.high %v361_v13, %v361_v13  ;;  %v377_v16 = vrot.slane %v361_v13, %v1731_v11  ;;  %v1737_v18 = vrot.slane %v354_v15, %v1731_v11 }
  0x60   :  { %1331 = vmatprep.subr.bf16.mxu0 %v1442_v39  ;;  %1353 = vmatprep.subr.bf16.mxu1 %v1443_v40 }
  0x61   :  { %v391_v17 = vrot.slane %v369_v14, %v1731_v11  ;;  %v399_v19 = vcombine.high %v377_v16, %v377_v16  ;;  %v370_v21 = vcombine.high %v1737_v18, %v1737_v18  ;;  %v404_v22 = vpack.i.b16 %v377_v16, %v377_v16  ;;  %v1480_v16 = vld [vmem:[#allocation8 + $0x110] sm:$0xff]  }
  0x63   :  { %1332 = vmatpush3.bf16.msra.mxu0 %v1444_v41  ;;  %1354 = vmatpush3.bf16.msra.mxu1 %v1445_v42  ;;  %v401_v20 = vcombine.high %v391_v17, %v391_v17  ;;  %v418_v24 = vpack.i.b16 %v399_v19, %v399_v19  ;;  %v411_v25 = vpack.i.b16 %v391_v17, %v391_v17  ;;  %v1481_v19 = vld [vmem:[#allocation8 + $0x190] sm:$0xff]  }
  0x64   :  { %1333 = vmatprep.subr.bf16.mxu0 %v1446_v43  ;;  %1355 = vmatprep.subr.bf16.mxu1 %v1447_v44  ;;  %v398_v27 = vrot.slane %v370_v21, %v1731_v11  ;;  %v409_v28 = vrot.slane %v404_v22, %v1741_v23  ;;  %v1483_v22 = vld [vmem:[#allocation8 + $0x1d8] sm:$0xff]  }
  0x65   :  { %v425_v26 = vpack.i.b16 %v401_v20, %v401_v20  ;;  %v423_v30 = vrot.slane %v418_v24, %v1741_v23  ;;  %v416_v31 = vrot.slane %v411_v25, %v1741_v23  ;;  %v1482_v20 = vld [vmem:[#allocation8 + $0x158] sm:$0xff]   ;;  %v384_v25 = vrot.slane %v1737_v18, %v1731_v11  ;;  %v1494_v18 = vld [vmem:[#allocation8 + $0x1a8] sm:$0xff]  }
  0x66   :  { %v402_v36 = vcombine.high %v398_v27, %v398_v27  ;;  %v1484_v24 = vld [vmem:[#allocation8 + $0x118] sm:$0xff]  }
  0x67   :  { %1334 = vmatpush3.bf16.msra.mxu0 %v1448_v45  ;;  %1356 = vmatpush3.bf16.msra.mxu1 %v1449_v46  ;;  %v430_v35 = vrot.slane %v425_v26, %v1741_v23  ;;  %v1485_v26 = vld [vmem:[#allocation8 + $0x198] sm:$0xff]   ;;  %v432_v11 = vpack.i.b16 %v384_v25, %v384_v25 }
  0x68   :  { %1335 = vmatprep.subr.bf16.mxu0 %v1450_v47  ;;  %1357 = vmatprep.subr.bf16.mxu1 %v1451_v48  ;;  %v439_v48 = vpack.i.b16 %v398_v27, %v398_v27  ;;  %v1486_v27 = vld [vmem:[#allocation8 + $0x160] sm:$0xff]  }
  0x6b   :  { %1336 = vmatpush3.bf16.msra.mxu0 %v1452_v49  ;;  %1358 = vmatpush3.bf16.msra.mxu1 %v1453_v50  ;;  %v453_v50 = vpack.i.b16 %v402_v36, %v402_v36  ;;  %v1495_v36 = vld [vmem:[#allocation8 + $0x170] sm:$0xff]  }
  0x6c   :  { %1337 = vmatprep.subr.bf16.mxu0 %v1454_v51  ;;  %1359 = vmatprep.subr.bf16.mxu1 %v1455_v52 }
  0x6f   :  { %1338 = vmatpush3.bf16.msra.mxu0 %v1456_v53  ;;  %1360 = vmatpush3.bf16.msra.mxu1 %v1457_v54  ;;  %v1472_v53 = vld [vmem:[#allocation8 + $0x100] sm:$0xff]  }
  0x70   :  { %1339 = vmatprep.subr.bf16.mxu0 %v1458_v55  ;;  %1361 = vmatprep.subr.bf16.mxu1 %v1459_v56  ;;  %v1473_v56 = vld [vmem:[#allocation8 + $0x180] sm:$0xff]  }
  0x73   :  { %1340 = vmatpush3.bf16.msra.mxu0 %v1460_v57  ;;  %1362 = vmatpush3.bf16.msra.mxu1 %v1461_v58  ;;  %v1474_v57 = vld [vmem:[#allocation8 + $0x148] sm:$0xff]  }
  0x74   :  { %1341 = vmatprep.subr.bf16.mxu0 %v1462_v59  ;;  %1363 = vmatprep.subr.bf16.mxu1 %v1463_v60  ;;  %v1475_v58 = vld [vmem:[#allocation8 + $0x1c8] sm:$0xff]   ;;  %v444_v60 = vrot.slane %v439_v48, %v1741_v23 }
  0x77   :  { %1342 = vmatpush3.bf16.msra.mxu0 %v1464_v61  ;;  %1364 = vmatpush3.bf16.msra.mxu1 %v1465_v62 }
  0x78   :  { %1343 = vmatprep.subr.bf16.mxu0 %v1466_v63  ;;  %1365 = vmatprep.subr.bf16.mxu1 %v1467_v1  ;;  %v458_v63 = vrot.slane %v453_v50, %v1741_v23  ;;  %v1476_v1 = vld [vmem:[#allocation8 + $0x108] sm:$0xff]  }
  0x7b   :  { %1344 = vmatpush3.bf16.msra.mxu0 %v1468_v2  ;;  %1366 = vmatpush3.bf16.msra.mxu1 %v1469_v3 }
  0x7c   :  { %1373 = vmatprep.subr.bf16.mxu0 %v1470_v4  ;;  %1395 = vmatprep.subr.bf16.mxu1 %v1471_v5  ;;  %v1477_v5 = vld [vmem:[#allocation8 + $0x188] sm:$0xff]  }
 0x129   :  { %v214_v29 = vpop.f32.mrb[0].mxu0  ;;  %v255_v33 = vpop.f32.mrb[0].mxu1 }
 0x12a   :  { %v344_v32 = vpack.c.bf16 %v214_v29, %v214_v29  ;;  %v216_v34 = vpop.f32.mrb[1].mxu0  ;;  %v346_v37 = vpack.c.bf16 %v255_v33, %v255_v33  ;;  %v257_v39 = vpop.f32.mrb[1].mxu1  ;;  %v1488_v29 = vld [vmem:[#allocation8 + $0x120] sm:$0xff]   ;;  %v1492_v33 = vld [vmem:[#allocation8 + $0x1e8] sm:$0xff]  }
 0x12b   :  { %v345_v38 = vpack.c.bf16 %v216_v34, %v216_v34  ;;  %v218_v40 = vpop.f32.mrb[2].mxu0  ;;  %v347_v42 = vpack.c.bf16 %v257_v39, %v257_v39  ;;  %v259_v43 = vpop.f32.mrb[2].mxu1  ;;  %v1493_v34 = vld [vmem:[#allocation8 + $0x128] sm:$0xff]  }
 0x12c   :  { %v459_v41 = vadd.bf16 %v409_v28, %v344_v32  ;;  %v219_v44 = vpop.f32.mrb[3].mxu0  ;;  %v461_v45 = vadd.bf16 %v423_v30, %v346_v37  ;;  %v260_v47 = vpop.f32.mrb[3].mxu1  ;;  %v1487_v28 = vld [vmem:[#allocation8 + $0x1e0] sm:$0xff]   ;;  %v400_v30 = vcombine.high %v384_v25, %v384_v25  ;;  %v1491_v32 = vld [vmem:[#allocation8 + $0x168] sm:$0xff]   ;;  %v1496_v37 = vld [vmem:[#allocation8 + $0x1f0] sm:$0xff]  }
 0x12d   :  { %v460_v46 = vadd.bf16 %v416_v31, %v345_v38  ;;  %v462_v49 = vadd.bf16 %v430_v35, %v347_v42  ;;  %v1489_v31 = vld [vmem:[#allocation8 + $0x1a0] sm:$0xff]   ;;  %v1497_v40 = vld [vmem:[#allocation8 + $0x130] sm:$0xff]   ;;  %v437_v42 = vrot.slane %v432_v11, %v1741_v23  ;;  %v1499_v44 = vld [vmem:[#allocation8 + $0x178] sm:$0xff]  }
 0x12e   :  { %v469_v51 = vmax.bf16 %v1629_v0, %v461_v45  ;;  %v467_v54 = vmax.bf16 %v1629_v0, %v459_v41  ;;  %v446_v35 = vpack.i.b16 %v400_v30, %v400_v30  ;;  %v1498_v43 = vld [vmem:[#allocation8 + $0x1b0] sm:$0xff]   ;;  %v1500_v45 = vld [vmem:[#allocation8 + $0x1f8] sm:$0xff]  }
 0x12f   :  { %v468_v52 = vmax.bf16 %v1629_v0, %v460_v46  ;;  %v470_v55 = vmax.bf16 %v1629_v0, %v462_v49  ;;  %v1501_v47 = vld [vmem:[#allocation8 + $0x138] sm:$0xff]  }
 0x130   :  { %v451_v39 = vrot.slane %v446_v35, %v1741_v23  ;;  %v1502_v49 = vld [vmem:[#allocation8 + $0x1b8] sm:$0xff]   ;;  %v1631_v23 = vmov 0.0  }
 0x131   :  { %1026 = vmatprep.mubr.bf16.mxu0 %v468_v52  ;;  %v1752_v59 = vpop.f32.mrb[4].mxu0  ;;  %1066 = vmatprep.mubr.bf16.mxu1 %v470_v55  ;;  %v1755_v62 = vpop.f32.mrb[4].mxu1 }
 0x132   :  { %1027 = vmatmul.mubr.bf16.vlgmr.msra.gmra.mrb[8].mxu0 %v467_v54  ;;  %v298_v61 = vpop.f32.mrb[5].mxu0  ;;  %1067 = vmatmul.mubr.bf16.vlgmr.msra.gmra.mrb[8].mxu1 %v469_v51  ;;  %v339_v4 = vpop.f32.mrb[5].mxu1  ;;  %v350_v38 = vpack.c.bf16 %v1755_v62, %v1755_v62  ;;  %v348_v41 = vpack.c.bf16 %v1752_v59, %v1752_v59  ;;  %v1263_v54 = vld [vmem:[%s1796_s4] ss:$0 sm:$0xff] }
 0x133   :  { %1374 = vmatpush3.bf16.msra.mxu0 %v1472_v53  ;;  %v349_v2 = vpack.c.bf16 %v298_v61, %v298_v61  ;;  %v300_v3 = vpop.f32.mrb[6].mxu0  ;;  %1396 = vmatpush3.bf16.msra.mxu1 %v1473_v56  ;;  %v351_v9 = vpack.c.bf16 %v339_v4, %v339_v4  ;;  %v341_v10 = vpop.f32.mrb[6].mxu1 }
 0x134   :  { %1375 = vmatprep.subr.bf16.mxu0 %v1474_v57  ;;  %v301_v7 = vpop.f32.mrb[7].mxu0  ;;  %1397 = vmatprep.subr.bf16.mxu1 %v1475_v58  ;;  %v342_v14 = vpop.f32.mrb[7].mxu1  ;;  %v465_v46 = vadd.bf16 %v451_v39, %v350_v38  ;;  %v463_v48 = vadd.bf16 %v437_v42, %v348_v41 }
 0x135   :  { %v464_v13 = vadd.bf16 %v444_v60, %v349_v2  ;;  %v466_v15 = vadd.bf16 %v458_v63, %v351_v9 }
 0x136   :  { %v473_v50 = vmax.bf16 %v1629_v0, %v465_v46  ;;  %v471_v51 = vmax.bf16 %v1629_v0, %v463_v48 }
 0x137   :  { %1376 = vmatpush3.bf16.msra.mxu0 %v1476_v1  ;;  %v472_v17 = vmax.bf16 %v1629_v0, %v464_v13  ;;  %1398 = vmatpush3.bf16.msra.mxu1 %v1477_v5  ;;  %v474_v21 = vmax.bf16 %v1629_v0, %v466_v15  ;;  %v1154_v15 = vld [vmem:[%s1797_s5] sm:$0xff]  ;;  %s1633_s5 = smov [#allocation10]  }
 0x138   :  { %1377 = vmatprep.subr.bf16.mxu0 %v1478_v6  ;;  %1399 = vmatprep.subr.bf16.mxu1 %v1479_v12  ;;  %s1228_s28 = sshll.u32 %s1633_s5, 4  ;;  %s1229_s28 = int_to_ptr.vmem [resolvable:$true] %s1228_s28 }
 0x139   :  { %1106 = vmatprep.mubr.bf16.mxu0 %v472_v17  ;;  %1146 = vmatprep.mubr.bf16.mxu1 %v474_v21  ;;  %s1591_s29 = scalar_lea.vmem %s1229_s28, 64  ;;  %p1596_p5 = scmp.lt.s32.totalorder %s1229_s28, %s1229_s28 }
 0x13a   :  { %p1592_p4 = scmp.ne.s32.totalorder %s1229_s28, %s1591_s29  ;;  %p1597_p6 = scmp.lt.s32.totalorder %s1591_s29, %s1591_s29 }
 0x13b   :  { %1378 = vmatpush3.bf16.msra.mxu0 %v1480_v16  ;;  %1400 = vmatpush3.bf16.msra.mxu1 %v1481_v19  ;;  %v1155_v19 = vpack.c.bf16 %v1154_v15, %v1154_v15 }
 0x13c   :  { %1379 = vmatprep.subr.bf16.mxu0 %v1482_v20  ;;  %1401 = vmatprep.subr.bf16.mxu1 %v1483_v22  ;;  %v1216_v20 = vand.u32 127, %v358_v8  ;;  %p1598_p7 = por %p1597_p6, %p1596_p5 }
 0x13e   :  { %vm1217_vm4 = vcmp.eq.s32.totalorder %v1216_v20, 64  ;;  %p1599_p8 = pnand %p1598_p7, %p1592_p4 }
 0x13f   :  { %1380 = vmatpush3.bf16.msra.mxu0 %v1484_v24  ;;  %1402 = vmatpush3.bf16.msra.mxu1 %v1485_v26 }
 0x140   :  { %1381 = vmatprep.subr.bf16.mxu0 %v1486_v27  ;;  %1403 = vmatprep.subr.bf16.mxu1 %v1487_v28 }
 0x143   :  { %1382 = vmatpush3.bf16.msra.mxu0 %v1488_v29  ;;  %1404 = vmatpush3.bf16.msra.mxu1 %v1489_v31 }
 0x144   :  { %1383 = vmatprep.subr.bf16.mxu0 %v1491_v32  ;;  %1405 = vmatprep.subr.bf16.mxu1 %v1492_v33 }
 0x147   :  { %1384 = vmatpush3.bf16.msra.mxu0 %v1493_v34  ;;  %1406 = vmatpush3.bf16.msra.mxu1 %v1494_v18 }
 0x148   :  { %1385 = vmatprep.subr.bf16.mxu0 %v1495_v36  ;;  %1407 = vmatprep.subr.bf16.mxu1 %v1496_v37 }
 0x14b   :  { %1386 = vmatpush3.bf16.msra.mxu0 %v1497_v40  ;;  %1408 = vmatpush3.bf16.msra.mxu1 %v1498_v43 }
 0x14c   :  { %1387 = vmatprep.subr.bf16.mxu0 %v1499_v44  ;;  %1409 = vmatprep.subr.bf16.mxu1 %v1500_v45 }
 0x14f   :  { %1388 = vmatpush3.bf16.msra.mxu0 %v1501_v47  ;;  %1410 = vmatpush3.bf16.msra.mxu1 %v1502_v49 }
 0x150   :  { %1419 = vmatprep.subr.bf16.mxu0 %v1631_v23 }
 0x152   :  { %1107 = vmatmul.mubr.bf16.vlgmr.msra.gmra.mrb[12].mxu0 %v471_v51  ;;  %1147 = vmatmul.mubr.bf16.vlgmr.msra.gmra.mrb[12].mxu1 %v473_v50 }
 0x153   :  { %1421 = vmatprep.mubr.msk.bf16.mxu0 %vm1632_vm1, %v1631_v23 }
 0x205   :  { %v1345_v52 = vpop.f32.mrb[8].mxu0  ;;  %v1367_v53 = vpop.f32.mrb[8].mxu1 }
 0x206   :  { %v1346_v55 = vpop.f32.mrb[9].mxu0  ;;  %v1368_v57 = vpop.f32.mrb[9].mxu1 }
 0x207   :  { %v1347_v56 = vadd.f32 %v1346_v55, %v1345_v52  ;;  %v1348_v58 = vpop.f32.mrb[10].mxu0  ;;  %v1369_v59 = vadd.f32 %v1368_v57, %v1367_v53  ;;  %v1370_v60 = vpop.f32.mrb[10].mxu1 }
 0x208   :  { %v1349_v0 = vpop.f32.mrb[11].mxu0  ;;  %v1371_v62 = vpop.f32.mrb[11].mxu1 }
 0x209   :  { %v1029_v61 = vadd.f32 %v1347_v56, %v1263_v54 }
 0x20b   :  { %v1069_v63 = vadd.f32 %v1369_v59, %v1029_v61 }
 0x225   :  { %v1389_v1 = vpop.f32.mrb[12].mxu0  ;;  %v1411_v2 = vpop.f32.mrb[12].mxu1 }
 0x226   :  { %v1390_v3 = vpop.f32.mrb[13].mxu0  ;;  %v1412_v5 = vpop.f32.mrb[13].mxu1 }
 0x227   :  { %v1391_v4 = vadd.f32 %v1390_v3, %v1389_v1  ;;  %v1392_v6 = vpop.f32.mrb[14].mxu0  ;;  %v1413_v7 = vadd.f32 %v1412_v5, %v1411_v2  ;;  %v1414_v9 = vpop.f32.mrb[14].mxu1 }
 0x228   :  { %v1393_v10 = vpop.f32.mrb[15].mxu0  ;;  %v1415_v13 = vpop.f32.mrb[15].mxu1 }
 0x229   :  { %v1109_v12 = vadd.f32 %v1391_v4, %v1069_v63 }
 0x22b   :  { %v1149_v14 = vadd.f32 %v1413_v7, %v1109_v12 }
 0x22d   :  { %v1156_v16 = vpack.c.bf16 %v1149_v14, %v1149_v14 }
 0x22f   :  { %v1163_v17 = vsel %vm1161_vm2, %v1156_v16, 0 }
 0x230   :  { %1420 = vmatpush3.bf16.msra.mxu0 %v1163_v17 }
 0x233   :  { %1422 = vmatmul.mubr.msk.bf16.vlgmr.msra.gmra.mrb[16].mxu0 %vm1157_vm3, %v1155_v19 }
 0x306   :  { %v1199_v21 = vpop.f32.mrb[16].mxu0 }
 0x307   :  { %v1218_v22 = vmul.f32 -2.0, %v1199_v21  ;;  %v1423_v24 = vpop.f32.mrb[17].mxu0  ;;  %1208 = vadd.xlane.f32.xlu0 %v1199_v21  ;;  %v1205_v27 = vmul.f32 %v1199_v21, %v1199_v21 }
 0x308   :  { %v1202_v25 = vpop.f32.mrb[18].mxu0 }
 0x309   :  { %v1424_v26 = vpop.f32.mrb[19].mxu0  ;;  %v1219_v28 = vsel %vm1217_vm4, 1.0, %v1218_v22 }
 0x30a   :  { %v1220_v29 = vpack.c.bf16 %v1219_v28, %v1219_v28 }
 0x30b   :  { %1206 = vadd.xlane.f32.xlu0 %v1205_v27 }
 0x30c   :  { %1221 = vst [vmem:[#allocation10] sm:$0xf] %v1220_v29 }
 0x30d   :  { %1602 = shalt.err (!%p1599_p8)
}
 0x30e   :  { %s1603_s9 = scalar_lea.hbm %s1798_s6, 64 }
 0x30f   :  { %p1604_p9 = scmp.ne.s32.totalorder %s1798_s6, %s1603_s9  ;;  %p1607_p10 = scmp.lt.u32.totalorder %s1603_s9, %s1798_s6 }
 0x311   :  { %p1609_p11 = pnand %p1607_p10, %p1604_p9 }
 0x313   :  { %1612 = shalt.err (!%p1609_p11)
}
 0x314   :  { %1231 = dma.vmem_to_hbm [thread:$0]  %s1229_s28, 64, %s1798_s6, [#allocation4]   ;;  %vm1213_vm5 = vcmask 7168  }
 0x394   :  { %v1209_v8 = vpop.xlane.xlu0 %1208 }
 0x395   :  { %v1210_v30 = vmul.f32 2e-06, %v1209_v8 }
 0x398   :  { %v1207_v31 = vpop.xlane.xlu0 %1206 }
 0x399   :  { %v1211_v32 = vadd.f32 %v1210_v30, %v1207_v31 }
 0x39b   :  { %v1212_v33 = vadd.f32 6.4e-11, %v1211_v32 }
 0x39d   :  { %1214 = vst.msk [vmem:[%s1799_s7] sm:$0xff] %vm1213_vm5, %v1212_v33 }
 0x39e   :  { %1619 = dma.done.wait [#allocation4], 64  }
 0x39f   :  { %1620 = vsyncadd [#allocation4], 4294967232 }
 0x3a0   :  { %1239 = vsyncpa [#allocation3], 1 }
 0x3a1   :  { %1240 = vsyncpa [#allocation6], 1 }
 0x3a2   :  { %1241 = vsyncpa [#allocation9], 1 }
 0x3a3   :  { %1242 = vsyncpa [#allocation4], 1 }

</bundles_post_ra>
